<compile_context>
chip_gen: v5e
topology: v5e:2x2
jax: 0.10.0
libtpu: 0.0.40
codegen_flags: <defaults>
</compile_context>

<pallas_src>
import numpy as np
import jax
import jax.numpy as jnp
from jax.experimental import pallas as pl
from jax.experimental.pallas import tpu as pltpu


# ------------------------------- helpers -----------------------------------

def _round_up(x: int, m: int) -> int:
    return ((x + m - 1) // m) * m


# ------------------------- parameter construction --------------------------

def make_params(p: int, width: int, task: str = "addition"):
    """Deterministic init matching ModularArithmeticNet.init_weights."""
    k = np.arange(width, dtype=np.float64)[:, None]          # (width, 1)
    n = np.arange(p, dtype=np.float64)[None, :]               # (1, p)
    if task == "addition":
        freq = 2.0 * np.pi / p
    elif task == "multiplication":
        freq = 2.0 * np.pi / (p - 1)
    else:
        raise ValueError(task)
    U1 = np.cos(freq * k * n).astype(np.float32)               # (width, p)
    U2 = np.cos(freq * k * n).astype(np.float32)               # (width, p)
    W = np.cos(-freq * k * n).astype(np.float32).T             # (p, width)
    return jnp.asarray(U1), jnp.asarray(U2), jnp.asarray(W)


def prepare_weights(U1, U2, W):
    """One-time (init-time) transpose + zero-pad to 128-lane-dense layouts.

    Returns:
      u12t_pad : (2*p_pad, width_pad) = [U1.T ; U2.T] zero-padded and stacked
                 along the contracting (row) axis for a single fused gather
                 matmul.
      wt_pad   : (width_pad, p_pad)   = zero-padded W.T

    Zero padding is correctness-neutral: indices are always < p (so padded
    rows of U.T are never selected), padded width columns of x1+x2 are zero,
    and padded output columns are sliced off by the wrapper.
    """
    width, p = U1.shape
    p_pad = _round_up(p, 128)
    width_pad = _round_up(width, 128)

    def pad(a, rows, cols):
        out = np.zeros((rows, cols), dtype=np.float32)
        out[: a.shape[0], : a.shape[1]] = np.asarray(a)
        return out

    u1t_pad = pad(np.asarray(U1).T, p_pad, width_pad)      # (p_pad, width_pad)
    u2t_pad = pad(np.asarray(U2).T, p_pad, width_pad)      # (p_pad, width_pad)
    u12t_pad = np.concatenate([u1t_pad, u2t_pad], axis=0)  # (2*p_pad, width_pad)
    wt_pad = pad(np.asarray(W).T, width_pad, p_pad)        # (width_pad, p_pad)
    return jnp.asarray(u12t_pad), jnp.asarray(wt_pad), p_pad, width_pad


# ------------------------------ Pallas kernel -------------------------------

def _mod_arith_kernel(x_ref, u12t_ref, wt_ref, out_ref):
    tb = x_ref.shape[0]
    two_p_pad = u12t_ref.shape[0]
    p_pad = two_p_pad // 2

    # int32 indices for this batch tile.
    xv = x_ref[...]                                    # (TB, 2) int32
    idx1 = xv[:, 0:1]                                  # (TB, 1)
    idx2 = xv[:, 1:2] + p_pad                          # (TB, 1) -> second half

    # Combined one-hot selector built in-register (no HBM traffic for it):
    # column j selects U1.T row j for j < p_pad, U2.T row j-p_pad otherwise.
    cols = jax.lax.broadcasted_iota(jnp.int32, (tb, two_p_pad), 1)
    oh = jnp.logical_or(cols == idx1, cols == idx2).astype(jnp.float32)

    # Single fused "gather-and-add" matmul: oh @ [U1.T ; U2.T] = x1 + x2.
    xsum = jnp.dot(oh, u12t_ref[...], preferred_element_type=jnp.float32)

    # VPU square, then lane-dense output matmul (unmasked vst stores).
    h = xsum * xsum                                    # (TB, width_pad)
    out_ref[...] = jnp.dot(h, wt_ref[...], preferred_element_type=jnp.float32)


# --------------------------------- wrapper ----------------------------------

def modular_arithmetic_forward(x, u12t_pad, wt_pad, p, *, tb=None):
    """x: int (B, 2); prepared padded weights from prepare_weights().

    Returns float32 (B, p).
    """
    x = x.astype(jnp.int32)
    B = x.shape[0]
    two_p_pad, width_pad = u12t_pad.shape
    p_pad = two_p_pad // 2

    # Batch tile: biggest reasonable tile, sublane-aligned (multiple of 8).
    if tb is None:
        tb = min(512, _round_up(B, 8))
    B_pad = _round_up(B, tb)
    if B_pad != B:
        # Pad with index 0 (valid residue); padded rows are sliced off below.
        x = jnp.pad(x, ((0, B_pad - B), (0, 0)))

    grid = (B_pad // tb,)

    flops = 6 * B_pad * p_pad * width_pad             # fused gather mm + output mm
    bytes_accessed = (
        B_pad * 2 * 4                                  # indices in
        + (two_p_pad + p_pad) * width_pad * 4          # resident weights
        + B_pad * p_pad * 4                            # output out
    )

    out = pl.pallas_call(
        _mod_arith_kernel,
        out_shape=jax.ShapeDtypeStruct((B_pad, p_pad), jnp.float32),
        grid=grid,
        in_specs=[
            pl.BlockSpec((tb, 2), lambda i: (i, 0)),                    # indices
            pl.BlockSpec((two_p_pad, width_pad), lambda i: (0, 0)),     # [U1.T;U2.T] (resident)
            pl.BlockSpec((width_pad, p_pad), lambda i: (0, 0)),         # W.T (resident)
        ],
        out_specs=pl.BlockSpec((tb, p_pad), lambda i: (i, 0)),
        compiler_params=pltpu.CompilerParams(
            dimension_semantics=("parallel",)),
        cost_estimate=pl.CostEstimate(
            flops=int(flops), transcendentals=0,
            bytes_accessed=int(bytes_accessed)),
    )(x, u12t_pad, wt_pad)

    return out[:B, :p]


# --------------------------------- driver -----------------------------------

def _reference(x, U1, U2, W):
    p = U1.shape[1]
    x1 = jax.nn.one_hot(x[:, 0], p, dtype=jnp.float32) @ U1.T
    x2 = jax.nn.one_hot(x[:, 1], p, dtype=jnp.float32) @ U2.T
    return ((x1 + x2) ** 2) @ W.T


if __name__ == "__main__":
    p = 16        # modulus
    width = 32    # hidden width
    B = 8         # batch of (a, b) pairs

    # Module parameters (as in the nn.Module) + one-time kernel-layout prep.
    U1, U2, W = make_params(p, width, task="addition")
    u12t_pad, wt_pad, _, _ = prepare_weights(U1, U2, W)

    key = jax.random.PRNGKey(0)
    x = jax.random.randint(key, (B, 2), minval=0, maxval=p, dtype=jnp.int32)

    out = modular_arithmetic_forward(x, u12t_pad, wt_pad, p)
    out = jax.block_until_ready(out)

    ref = _reference(x, U1, U2, W)
    assert out.shape == (B, p)
    assert jnp.allclose(out, ref, atol=1e-4, rtol=1e-4), "mismatch vs reference"

    print("KERNEL_OK")
</pallas_src>

<mosaic_0001>
module attributes {stable_mosaic.version = 11 : i64} {
  func.func @_mod_arith_kernel(%arg0: i32, %arg1: memref<8x2xi32, #tpu.memory_space<vmem>>, %arg2: memref<256x128xf32, #tpu.memory_space<vmem>>, %arg3: memref<128x128xf32, #tpu.memory_space<vmem>>, %arg4: memref<8x128xf32, #tpu.memory_space<vmem>>) attributes {dimension_semantics = [#tpu.dimension_semantics<parallel>], iteration_bounds = array<i64: 1>, scalar_prefetch = 0 : i64, scratch_operands = 0 : i64, tpu.core_type = #tpu.core_type<tc>, window_params = [{transform_indices = @transform_0, window_bounds = array<i64: 8, 2>}, {pipeline_mode = #tpu.pipeline_mode<synchronous>, transform_indices = @transform_1, window_bounds = array<i64: 256, 128>}, {pipeline_mode = #tpu.pipeline_mode<synchronous>, transform_indices = @transform_2, window_bounds = array<i64: 128, 128>}, {transform_indices = @transform_3, window_bounds = array<i64: 8, 128>}]} {
    %c0 = arith.constant 0 : index
    %c0_0 = arith.constant 0 : index
    %0 = vector.load %arg1[%c0, %c0_0] : memref<8x2xi32, #tpu.memory_space<vmem>>, vector<8x2xi32>
    %1 = vector.extract_strided_slice %0 {offsets = [0, 0], sizes = [8, 1], strides = [1, 1]} : vector<8x2xi32> to vector<8x1xi32>
    %2 = vector.extract_strided_slice %0 {offsets = [0, 1], sizes = [8, 1], strides = [1, 1]} : vector<8x2xi32> to vector<8x1xi32>
    %c128_i32 = arith.constant 128 : i32
    %3 = vector.broadcast %c128_i32 : i32 to vector<8x1xi32>
    %4 = arith.addi %2, %3 : vector<8x1xi32>
    %5 = tpu.iota {dimensions = array<i32: 1>} : vector<8x256xi32>
    %6 = vector.broadcast %1 : vector<8x1xi32> to vector<8x256xi32>
    %7 = arith.cmpi eq, %5, %6 : vector<8x256xi32>
    %8 = vector.broadcast %4 : vector<8x1xi32> to vector<8x256xi32>
    %9 = arith.cmpi eq, %5, %8 : vector<8x256xi32>
    %10 = arith.ori %7, %9 : vector<8x256xi1>
    %11 = arith.extui %10 : vector<8x256xi1> to vector<8x256xi32>
    %12 = arith.sitofp %11 : vector<8x256xi32> to vector<8x256xf32>
    %c0_1 = arith.constant 0 : index
    %c0_2 = arith.constant 0 : index
    %13 = vector.load %arg2[%c0_1, %c0_2] : memref<256x128xf32, #tpu.memory_space<vmem>>, vector<256x128xf32>
    %cst = arith.constant dense<0.000000e+00> : vector<8x128xf32>
    %14 = tpu.matmul %12, %13, %cst {dimension_numbers = #tpu.dot_dimension_numbers<[1], [0], [0], [1], [0, 0, 1, 1], [], []>} : vector<8x256xf32>, vector<256x128xf32>, vector<8x128xf32> -> vector<8x128xf32>
    %15 = arith.mulf %14, %14 : vector<8x128xf32>
    %c0_3 = arith.constant 0 : index
    %c0_4 = arith.constant 0 : index
    %16 = vector.load %arg3[%c0_3, %c0_4] : memref<128x128xf32, #tpu.memory_space<vmem>>, vector<128x128xf32>
    %cst_5 = arith.constant dense<0.000000e+00> : vector<8x128xf32>
    %17 = tpu.matmul %15, %16, %cst_5 {dimension_numbers = #tpu.dot_dimension_numbers<[1], [0], [0], [1], [0, 0, 1, 1], [], []>} : vector<8x128xf32>, vector<128x128xf32>, vector<8x128xf32> -> vector<8x128xf32>
    %c0_6 = arith.constant 0 : index
    %c0_7 = arith.constant 0 : index
    %18 = vector.load %arg4[%c0_6, %c0_7] : memref<8x128xf32, #tpu.memory_space<vmem>>, vector<8x128xf32>
    tpu.vector_store %arg4[%c0_6, %c0_7], %17 {strides = array<i32>} : memref<8x128xf32, #tpu.memory_space<vmem>>, vector<8x128xf32>,
    return
  }
  func.func @transform_0(%arg0: i32) -> (i32, i32) {
    %c0_i32 = arith.constant 0 : i32
    %c0_i32_0 = arith.constant 0 : i32
    return %arg0, %c0_i32 : i32, i32
  }
  func.func @transform_1(%arg0: i32) -> (i32, i32) {
    %c0_i32 = arith.constant 0 : i32
    %c0_i32_0 = arith.constant 0 : i32
    %c0_i32_1 = arith.constant 0 : i32
    return %c0_i32, %c0_i32_0 : i32, i32
  }
  func.func @transform_2(%arg0: i32) -> (i32, i32) {
    %c0_i32 = arith.constant 0 : i32
    %c0_i32_0 = arith.constant 0 : i32
    %c0_i32_1 = arith.constant 0 : i32
    return %c0_i32, %c0_i32_0 : i32, i32
  }
  func.func @transform_3(%arg0: i32) -> (i32, i32) {
    %c0_i32 = arith.constant 0 : i32
    %c0_i32_0 = arith.constant 0 : i32
    return %arg0, %c0_i32 : i32, i32
  }
}

</mosaic_0001>

<bundles_post_ra>
// kernel: tpu_custom_call.1
= control target key start
LH: loop header
LB: loop body
LE: loop exit
PB: predicated region body
PF: predicated region fallthrough
CT: control target
= control target key end

     0   :  { %8 = vsyncpa [#allocation3], 0  ;;  %s328_s0 = inlined_call_operand.vmem [shape: s32[8,2], index: 0, kind: input, shape index: {}]   ;;  %s329_s1 = inlined_call_operand.hbm [shape: f32[256,128], index: 1, kind: input, shape index: {}]   ;;  %s330_s2 = inlined_call_operand.hbm [shape: f32[128,128], index: 2, kind: input, shape index: {}]   ;;  %s331_s3 = inlined_call_operand.hbm [shape: f32[8,128], index: 3, kind: output, shape index: {}]  }
   0x1   :  { %9 = vsyncpa [#allocation6], 0 }
   0x2   :  { %10 = vsyncpa [#allocation4], 0  ;;  %s17_s14 = sshll.u32 %s329_s1, 4  ;;  %s288_s15 = smov [#allocation2]   ;;  %s18_s14 = int_to_ptr.hbm [resolvable:$true] %s17_s14 }
   0x3   :  { %s19_s16 = sshll.u32 %s288_s15, 4  ;;  %s30_s19 = sshll.u32 %s330_s2, 4  ;;  %s20_s16 = int_to_ptr.vmem [resolvable:$true] %s19_s16  ;;  %s31_s19 = int_to_ptr.hbm [resolvable:$true] %s30_s19 }
   0x4   :  { %s289_s20 = smov 128   ;;  %s290_s21 = smov 8  }
   0x5   :  { %25 = dma.hbm_to_vmem [thread:$0]  %s18_s14, 4096, %s20_s16, [#allocation3], %s289_s20, %s289_s20, %s290_s21  }
   0x6   :  { %s291_s22 = smov [#allocation5]  }
   0x7   :  { %s32_s23 = sshll.u32 %s291_s22, 4  ;;  %s33_s23 = int_to_ptr.vmem [resolvable:$true] %s32_s23 }
   0x8   :  { %38 = dma.hbm_to_vmem [thread:$0]  %s31_s19, 2048, %s33_s23, [#allocation6], %s289_s20, %s289_s20, %s290_s21  }
   0x9   :  { %282 = dma.done.wait [#allocation3], 4096  }
   0xa   :  { %283 = vsyncadd [#allocation3], 4294963200 }
   0xb   :  { %284 = dma.done.wait [#allocation6], 2048  }
   0xc   :  { %285 = vsyncadd [#allocation6], 4294965248  ;;  %v292_v0 = vmov 0   ;;  %v47_v1 = vld [vmem:[%s328_s0] sm:$0xff]  ;;  %v83_v2 = vld [vmem:[#allocation2 + $0x78] sm:$0xff]  ;;  %v293_v14 = vmov 1   ;;  %v49_v46 = vlaneseq }
   0xd   :  { %208 = vset.pattern.permute.xlu0 %v292_v0  ;;  %v99_v3 = vld [vmem:[#allocation2 + $0xf8] sm:$0xff]  ;;  %100 = vmatpush.msra.mxu0 %v83_v2  ;;  %v82_v4 = vld [vmem:[#allocation2 + $0x70] sm:$0xff]  ;;  %v81_v6 = vld [vmem:[#allocation2 + $0x68] sm:$0xff]  ;;  %v48_v10 = vadd.s32 128, %v47_v1  ;;  %v294_v54 = vmov 1.0   ;;  %s295_s0 = smov [#allocation7]  }
   0xe   :  { %53 = vperm.xlu0 %208, %v47_v1   ;;  %v98_v5 = vld [vmem:[#allocation2 + $0xf0] sm:$0xff]  ;;  %120 = vmatpush.msra.mxu1 %v99_v3  ;;  %v97_v7 = vld [vmem:[#allocation2 + $0xe8] sm:$0xff]  ;;  %v80_v8 = vld [vmem:[#allocation2 + $0x60] sm:$0xff]  ;;  %v50_v50 = vand.u32 127, %v49_v46  ;;  %s183_s2 = sshll.u32 %s295_s0, 4  ;;  %s185_s27 = sshll.u32 %s331_s3, 4  ;;  %s184_s2 = int_to_ptr.vmem [resolvable:$true] %s183_s2  ;;  %s186_s27 = int_to_ptr.hbm [resolvable:$true] %s185_s27 }
   0xf   :  { %101 = vmatpush.msra.mxu0 %v82_v4  ;;  %v96_v9 = vld [vmem:[#allocation2 + $0xe0] sm:$0xff]  ;;  %v79_v11 = vld [vmem:[#allocation2 + $0x58] sm:$0xff]  ;;  %v78_v13 = vld [vmem:[#allocation2 + $0x50] sm:$0xff] }
  0x10   :  { %121 = vmatpush.msra.mxu1 %v98_v5  ;;  %v95_v12 = vld [vmem:[#allocation2 + $0xd8] sm:$0xff]  ;;  %v94_v15 = vld [vmem:[#allocation2 + $0xd0] sm:$0xff]  ;;  %v77_v16 = vld [vmem:[#allocation2 + $0x48] sm:$0xff]  ;;  %v51_v52 = vadd.s32 128, %v50_v50 }
  0x11   :  { %102 = vmatpush.msra.mxu0 %v81_v6  ;;  %v93_v17 = vld [vmem:[#allocation2 + $0xc8] sm:$0xff]  ;;  %v76_v18 = vld [vmem:[#allocation2 + $0x40] sm:$0xff]  ;;  %v75_v20 = vld [vmem:[#allocation2 + $0x38] sm:$0xff] }
  0x12   :  { %122 = vmatpush.msra.mxu1 %v97_v7  ;;  %v92_v19 = vld [vmem:[#allocation2 + $0xc0] sm:$0xff]  ;;  %v91_v21 = vld [vmem:[#allocation2 + $0xb8] sm:$0xff]  ;;  %v74_v22 = vld [vmem:[#allocation2 + $0x30] sm:$0xff] }
  0x13   :  { %103 = vmatpush.msra.mxu0 %v80_v8  ;;  %v90_v23 = vld [vmem:[#allocation2 + $0xb0] sm:$0xff]  ;;  %v73_v24 = vld [vmem:[#allocation2 + $0x28] sm:$0xff]  ;;  %v72_v26 = vld [vmem:[#allocation2 + $0x20] sm:$0xff] }
  0x14   :  { %123 = vmatpush.msra.mxu1 %v96_v9  ;;  %v89_v25 = vld [vmem:[#allocation2 + $0xa8] sm:$0xff]  ;;  %v88_v27 = vld [vmem:[#allocation2 + $0xa0] sm:$0xff]  ;;  %v71_v28 = vld [vmem:[#allocation2 + $0x18] sm:$0xff] }
  0x15   :  { %104 = vmatpush.msra.mxu0 %v79_v11  ;;  %v87_v29 = vld [vmem:[#allocation2 + $0x98] sm:$0xff]  ;;  %v70_v30 = vld [vmem:[#allocation2 + $0x10] sm:$0xff]  ;;  %v69_v32 = vld [vmem:[#allocation2 + $0x8] sm:$0xff] }
  0x16   :  { %209 = vset.pattern.permute.xlu0 %v293_v14  ;;  %124 = vmatpush.msra.mxu1 %v95_v12  ;;  %v86_v31 = vld [vmem:[#allocation2 + $0x90] sm:$0xff]  ;;  %v85_v33 = vld [vmem:[#allocation2 + $0x88] sm:$0xff]  ;;  %v68_v34 = vld [vmem:[#allocation2] sm:$0xff] }
  0x17   :  { %58 = vperm.xlu0 %209, %v48_v10   ;;  %105 = vmatpush.msra.mxu0 %v78_v13  ;;  %v84_v35 = vld [vmem:[#allocation2 + $0x80] sm:$0xff]  ;;  %v156_v36 = vld [vmem:[#allocation5 + $0x78] sm:$0xff]  ;;  %v155_v37 = vld [vmem:[#allocation5 + $0x70] sm:$0xff] }
  0x18   :  { %125 = vmatpush.msra.mxu1 %v94_v15  ;;  %157 = vmatpush.msra.mxu2 %v156_v36  ;;  %v154_v38 = vld [vmem:[#allocation5 + $0x68] sm:$0xff]  ;;  %v153_v39 = vld [vmem:[#allocation5 + $0x60] sm:$0xff]  ;;  %v152_v40 = vld [vmem:[#allocation5 + $0x58] sm:$0xff] }
  0x19   :  { %106 = vmatpush.msra.mxu0 %v77_v16  ;;  %v151_v41 = vld [vmem:[#allocation5 + $0x50] sm:$0xff]  ;;  %v150_v42 = vld [vmem:[#allocation5 + $0x48] sm:$0xff]  ;;  %v149_v43 = vld [vmem:[#allocation5 + $0x40] sm:$0xff] }
  0x1a   :  { %126 = vmatpush.msra.mxu1 %v93_v17  ;;  %158 = vmatpush.msra.mxu2 %v155_v37  ;;  %v148_v44 = vld [vmem:[#allocation5 + $0x38] sm:$0xff]  ;;  %v147_v45 = vld [vmem:[#allocation5 + $0x30] sm:$0xff]  ;;  %v146_v47 = vld [vmem:[#allocation5 + $0x28] sm:$0xff] }
  0x1b   :  { %107 = vmatpush.msra.mxu0 %v76_v18  ;;  %v145_v49 = vld [vmem:[#allocation5 + $0x20] sm:$0xff]  ;;  %v144_v51 = vld [vmem:[#allocation5 + $0x18] sm:$0xff]  ;;  %v143_v55 = vld [vmem:[#allocation5 + $0x10] sm:$0xff] }
  0x1c   :  { %127 = vmatpush.msra.mxu1 %v92_v19  ;;  %159 = vmatpush.msra.mxu2 %v154_v38  ;;  %v142_v56 = vld [vmem:[#allocation5 + $0x8] sm:$0xff]  ;;  %v141_v57 = vld [vmem:[#allocation5] sm:$0xff] }
  0x1d   :  { %108 = vmatpush.msra.mxu0 %v75_v20 }
  0x1e   :  { %128 = vmatpush.msra.mxu1 %v91_v21  ;;  %160 = vmatpush.msra.mxu2 %v153_v39 }
  0x1f   :  { %109 = vmatpush.msra.mxu0 %v74_v22 }
  0x20   :  { %129 = vmatpush.msra.mxu1 %v90_v23  ;;  %161 = vmatpush.msra.mxu2 %v152_v40 }
  0x21   :  { %110 = vmatpush.msra.mxu0 %v73_v24 }
  0x22   :  { %130 = vmatpush.msra.mxu1 %v89_v25  ;;  %162 = vmatpush.msra.mxu2 %v151_v41 }
  0x23   :  { %111 = vmatpush.msra.mxu0 %v72_v26 }
  0x24   :  { %131 = vmatpush.msra.mxu1 %v88_v27  ;;  %163 = vmatpush.msra.mxu2 %v150_v42 }
  0x25   :  { %112 = vmatpush.msra.mxu0 %v71_v28 }
  0x26   :  { %132 = vmatpush.msra.mxu1 %v87_v29  ;;  %164 = vmatpush.msra.mxu2 %v149_v43 }
  0x27   :  { %113 = vmatpush.msra.mxu0 %v70_v30 }
  0x28   :  { %133 = vmatpush.msra.mxu1 %v86_v31  ;;  %165 = vmatpush.msra.mxu2 %v148_v44 }
  0x29   :  { %114 = vmatpush.msra.mxu0 %v69_v32 }
  0x2a   :  { %134 = vmatpush.msra.mxu1 %v85_v33  ;;  %166 = vmatpush.msra.mxu2 %v147_v45 }
  0x2b   :  { %115 = vmatpush.msra.mxu0 %v68_v34 }
  0x2c   :  { %135 = vmatpush.msra.mxu1 %v84_v35  ;;  %167 = vmatpush.msra.mxu2 %v146_v47 }
  0x2e   :  { %168 = vmatpush.msra.mxu2 %v145_v49 }
  0x30   :  { %169 = vmatpush.msra.mxu2 %v144_v51 }
  0x32   :  { %170 = vmatpush.msra.mxu2 %v143_v55 }
  0x34   :  { %171 = vmatpush.msra.mxu2 %v142_v56 }
  0x36   :  { %172 = vmatpush.msra.mxu2 %v141_v57 }
  0x80   :  { %v54_v48 = vpop.permute.xlu0 %53 }
  0x81   :  { %vm55_vm0 = vcmp.eq.s32.totalorder %v50_v50, %v54_v48  ;;  %vm56_vm3 = vcmp.eq.s32.totalorder %v51_v52, %v54_v48 }
  0x89   :  { %v59_v53 = vpop.permute.xlu0 %58 }
  0x8a   :  { %vm60_vm1 = vcmp.eq.s32.totalorder %v50_v50, %v59_v53  ;;  %vm61_vm2 = vcmp.eq.s32.totalorder %v51_v52, %v59_v53 }
  0x8b   :  { %vm62_vm4 = vmor %vm55_vm0, %vm60_vm1 }
  0x8c   :  { %vm63_vm5 = vmor %vm56_vm3, %vm61_vm2  ;;  %198 = vmatmul.msk.f32.vlgmr.msra.gmra.mxu0 %vm62_vm4, %v294_v54 }
  0x8d   :  { %199 = vmatmul.msk.f32.vlgmr.msra.gmra.mxu1 %vm63_vm5, %v294_v54 }
 0x109   :  { %v117_v58 = vpop.f32.mrf.mxu0 }
 0x10a   :  { %v137_v59 = vpop.f32.mrf.mxu1 }
 0x10b   :  { %v138_v60 = vadd.f32 %v137_v59, %v117_v58 }
 0x10d   :  { %v140_v61 = vmul.f32 %v138_v60, %v138_v60 }
 0x10f   :  { %173 = vmatmul.f32.vlgmr.msra.gmra.mxu2 %v140_v61 }
 0x192   :  { %v174_v62 = vpop.f32.mrf.mxu2 }
 0x193   :  { %177 = vst [vmem:[#allocation7] sm:$0xff] %v174_v62 }
 0x194   :  { %188 = dma.vmem_to_hbm [thread:$0]  %s184_s2, 128, %s186_s27, [#allocation4]  }
 0x195   :  { %286 = dma.done.wait [#allocation4], 128  }
 0x196   :  { %287 = vsyncadd [#allocation4], 4294967168 }
 0x197   :  { %193 = vsyncpa [#allocation3], 1 }
 0x198   :  { %194 = vsyncpa [#allocation6], 1 }
 0x199   :  { %195 = vsyncpa [#allocation4], 1 }

</bundles_post_ra>
